<compile_context>
chip_gen: v7x
topology: tpu7x:2x2x1
jax: 0.10.0
libtpu: 0.0.40
codegen_flags: <defaults>
</compile_context>

<pallas_src>
import functools

import jax
import jax.numpy as jnp
from jax import lax
from jax.experimental import pallas as pl
from jax.experimental.pallas import tpu as pltpu


def _round_up(v, m):
    return ((v + m - 1) // m) * m


def _num_tensorcores_per_chip():
    """Best-effort TensorCores-per-chip count (v7x has 2). Perf hint only."""
    try:
        kind = jax.devices()[0].device_kind.lower()
    except Exception:
        return 1
    return 2 if "v7" in kind else 1


# ---------------------------------------------------------------------------
# add / mean: one-hot(batch) @ x segment-sum on the MXU, f32 accumulator.
# ---------------------------------------------------------------------------
def _make_sum_kernel(readout_type, num_graphs_pad, n_nodes, tile_n, use_bf16):
    has_cnt = readout_type == "mean"
    compute_dtype = jnp.bfloat16 if use_bf16 else jnp.float32
    needs_tail_mask = (n_nodes % tile_n) != 0      # static: tail rows may be garbage

    def kernel(*refs):
        if has_cnt:
            batch_ref, x_ref, inv_cnt_ref, out_ref, acc_ref = refs
        else:
            batch_ref, x_ref, out_ref, acc_ref = refs

        i = pl.program_id(1)                        # node-tile index (reduction)
        n_tiles = pl.num_programs(1)

        @pl.when(i == 0)
        def _():
            acc_ref[...] = jnp.zeros_like(acc_ref)

        b = batch_ref[...]                           # (1, tile_n) int32, lane-dense
        xm = x_ref[...].astype(compute_dtype)        # (tile_n, tile_f)

        if needs_tail_mask:
            # Last node tile comes from a clipped DMA: rows >= N hold garbage
            # (possibly NaN/Inf) that would poison the 0-mask matmul -> zero them.
            row_ids = lax.broadcasted_iota(jnp.int32, xm.shape, 0)
            limit = n_nodes - i * tile_n
            xm = jnp.where(row_ids < limit, xm, jnp.zeros_like(xm))

        # mask[g, n] == 1 iff node n belongs to graph g -> (B_pad, tile_n).
        # Tail nodes carry an out-of-range id, so their column is all-zero.
        graph_ids = lax.broadcasted_iota(
            jnp.int32, (num_graphs_pad, b.shape[1]), dimension=0)
        m = (graph_ids == b).astype(compute_dtype)

        # (B_pad, K) @ (K, tile_f) on the MXU, f32 accumulate. No transpose.
        acc_ref[...] += jnp.dot(m, xm, preferred_element_type=jnp.float32)

        @pl.when(i == n_tiles - 1)
        def _():
            res = acc_ref[...]
            if has_cnt:
                res = res * inv_cnt_ref[...]         # pre-inverted counts
            out_ref[...] = res.astype(out_ref.dtype)

    return kernel


# ---------------------------------------------------------------------------
# max: loop only over the graphs present in each node tile (scalar prefetch).
# ---------------------------------------------------------------------------
def _make_max_kernel(num_graphs_pad):
    def kernel(bounds_ref, batch_ref, x_ref, out_ref, acc_ref):
        i = pl.program_id(1)
        n_tiles = pl.num_programs(1)

        @pl.when(i == 0)
        def _():
            acc_ref[...] = jnp.full_like(acc_ref, -jnp.inf)

        b = batch_ref[...]                           # (tile_n, 1) int32; tail rows = B_pad
        x = x_ref[...].astype(jnp.float32)           # (tile_n, tile_f); tail rows garbage

        graph_rows = lax.broadcasted_iota(
            jnp.int32, (num_graphs_pad, 1), dimension=0)

        g_lo = bounds_ref[2 * i]                     # first graph id in this tile
        g_hi = bounds_ref[2 * i + 1]                 # last graph id in this tile

        def body(g, carry):
            # Tail/garbage rows carry an out-of-range id -> select -inf.
            masked = jnp.where(b == g, x, -jnp.inf)             # (tile_n, tile_f)
            row_max = jnp.max(masked, axis=0, keepdims=True)    # (1, tile_f) XLU reduce
            sel = graph_rows == g                                # (B_pad, 1)
            acc_ref[...] = jnp.where(
                sel, jnp.maximum(acc_ref[...], row_max), acc_ref[...])
            return carry

        lax.fori_loop(g_lo, g_hi + 1, body, 0)

        @pl.when(i == n_tiles - 1)
        def _():
            res = acc_ref[...]
            # graphs with zero nodes -> 0 instead of -inf
            res = jnp.where(res == -jnp.inf, jnp.zeros_like(res), res)
            out_ref[...] = res.astype(out_ref.dtype)

    return kernel


@functools.partial(jax.jit,
                   static_argnames=("num_graphs", "readout_type", "tile_n",
                                    "tile_f", "use_bf16_matmul"))
def graph_readout(x, batch, *, num_graphs, readout_type="mean",
                  tile_n=1024, tile_f=512, use_bf16_matmul=False):
    """Pallas equivalent of GRAPH_READOUT(type).forward(x, batch)."""
    if readout_type not in ("add", "mean", "max"):
        raise ValueError(f"unknown readout type: {readout_type}")

    n, f = x.shape
    out_dtype = x.dtype

    # ---- feature-axis geometry: pad only when F is not 128-aligned ----------
    f128 = _round_up(f, 128)
    tile_f = max(128, _round_up(tile_f, 128))
    if f128 <= tile_f:
        tile_f = f128
    else:
        for cand in (c for c in (1024, 512, 256, 128) if c <= tile_f):
            if f128 % cand == 0:
                tile_f = cand
                break
    f_pad = f128                                     # tile_f always divides f_pad

    # v7x: 2 TensorCores, and only the 'parallel' F axis is sharded across them;
    # make sure it has >= 2 tiles when possible.
    if (f_pad == tile_f and f_pad % 256 == 0
            and _num_tensorcores_per_chip() >= 2):
        tile_f = f_pad // 2

    # ---- node-axis geometry --------------------------------------------------
    tile_n = max(128, _round_up(tile_n, 128))
    tile_n = min(tile_n, _round_up(n, 128))          # don't over-tile tiny inputs
    n_node_tiles = pl.cdiv(n, tile_n)
    n_batch_pad = n_node_tiles * tile_n

    use_bf16 = bool(use_bf16_matmul) and readout_type in ("add", "mean")
    b_align = 16 if use_bf16 else 8                  # bf16 sublane packing
    b_pad = _round_up(max(num_graphs, 1), b_align)

    # ---- feature matrix: avoid the full padded copy --------------------------
    # Copy only when (a) F needs lane padding, (b) the whole input is smaller
    # than one node tile (tiny), or (c) down-casting to bf16 (halves HBM reads;
    # best when upstream already produces bf16).
    x_dtype_in = jnp.bfloat16 if use_bf16 else x.dtype
    pad_rows = tile_n - n if n < tile_n else 0       # < 128 rows, only for tiny N
    if f_pad != f or pad_rows > 0 or x.dtype != x_dtype_in:
        x_in = jnp.zeros((n + pad_rows, f_pad), x_dtype_in).at[:n, :f].set(
            x.astype(x_dtype_in))
    else:
        x_in = x                                     # zero-copy fast path

    # ---- batch ids: cheap (N int32) pad; tail nodes get an out-of-range id ---
    batch_i32 = batch.astype(jnp.int32)
    batch_p = jnp.full((n_batch_pad,), b_pad, jnp.int32).at[:n].set(batch_i32)

    grid = (f_pad // tile_f, n_node_tiles)           # (parallel F, reduction N)

    # ---- VMEM budget: single block set, x2 double-buffer, + scratch + margin -
    x_bytes = jnp.dtype(x_dtype_in).itemsize
    out_bytes = jnp.dtype(out_dtype).itemsize
    blk_once = (tile_n * tile_f * x_bytes + tile_n * 4
                + b_pad * tile_f * out_bytes + b_pad * 4)
    vmem_limit = 2 * blk_once + b_pad * tile_f * 4 + (8 << 20)
    vmem_limit = int(min(max(vmem_limit, 32 << 20), 48 << 20))   # v7x-safe cap

    compiler_params = pltpu.CompilerParams(
        dimension_semantics=("parallel", "arbitrary"),
        vmem_limit_bytes=vmem_limit)

    if readout_type == "max":
        # Per-node-tile [first, last] graph id, scalar-prefetched to SMEM.
        # Exploits PyG's sorted batch vector (1-2 graphs per tile); still
        # correct (just slower) if batch is unsorted.
        bt = batch_p.reshape(n_node_tiles, tile_n)
        lo = jnp.clip(jnp.min(bt, axis=1), 0, b_pad - 1)
        hi = jnp.clip(jnp.max(jnp.where(bt == b_pad, -1, bt), axis=1),
                      0, b_pad - 1)
        tile_bounds = jnp.stack([lo, hi], axis=1).reshape(-1).astype(jnp.int32)

        kernel = _make_max_kernel(b_pad)
        grid_spec = pltpu.PrefetchScalarGridSpec(
            num_scalar_prefetch=1,
            grid=grid,
            in_specs=[pl.BlockSpec((tile_n, 1), lambda j, i, tb: (i, 0)),
                      pl.BlockSpec((tile_n, tile_f), lambda j, i, tb: (i, j))],
            out_specs=pl.BlockSpec((b_pad, tile_f), lambda j, i, tb: (0, j)),
            scratch_shapes=[pltpu.VMEM((b_pad, tile_f), jnp.float32)])
        args = (tile_bounds, batch_p.reshape(n_batch_pad, 1), x_in)
    else:
        kernel = _make_sum_kernel(readout_type, b_pad, n, tile_n, use_bf16)
        in_specs = [pl.BlockSpec((1, tile_n), lambda j, i: (0, i)),
                    pl.BlockSpec((tile_n, tile_f), lambda j, i: (i, j))]
        args = [batch_p.reshape(1, n_batch_pad), x_in]
        if readout_type == "mean":
            # Counts are F-independent: one tiny segment-sum over (N,) ids in
            # the wrapper, pre-inverted so the kernel finalize is a multiply.
            counts = jnp.zeros((b_pad,), jnp.float32).at[batch_i32].add(1.0)
            inv_counts = (1.0 / jnp.maximum(counts, 1.0)).reshape(b_pad, 1)
            in_specs.append(pl.BlockSpec((b_pad, 1), lambda j, i: (0, 0)))
            args.append(inv_counts)
        # TODO(synk): add a graph-axis grid dim when num_graphs is very large
        # (>= ~256) so the (B_pad, tile_n) mask stays within one MXU pass.
        grid_spec = pltpu.PrefetchScalarGridSpec(
            num_scalar_prefetch=0,
            grid=grid,
            in_specs=in_specs,
            out_specs=pl.BlockSpec((b_pad, tile_f), lambda j, i: (0, j)),
            scratch_shapes=[pltpu.VMEM((b_pad, tile_f), jnp.float32)])
        args = tuple(args)

    out_p = pl.pallas_call(
        kernel,
        out_shape=jax.ShapeDtypeStruct((b_pad, f_pad), out_dtype),
        grid_spec=grid_spec,
        compiler_params=compiler_params,
    )(*args)

    return out_p[:num_graphs, :f]


def _reference_readout(x, batch, num_graphs, readout_type):
    """Plain-JAX reference matching torch_geometric global_*_pool."""
    oh = jax.nn.one_hot(batch, num_graphs, dtype=x.dtype)       # (N, B)
    sums = oh.T @ x                                             # (B, F)
    if readout_type == "add":
        return sums
    if readout_type == "mean":
        counts = jnp.maximum(oh.sum(axis=0)[:, None], 1.0)
        return sums / counts
    if readout_type == "max":
        masked = jnp.where(oh.T[:, :, None] > 0, x[None, :, :], -jnp.inf)
        return masked.max(axis=1)
    raise ValueError(readout_type)


if __name__ == "__main__":
    key = jax.random.PRNGKey(0)

    num_nodes = 16      # total nodes across the batch of graphs
    feat_dim = 32       # node feature / hidden dimension
    num_graphs = 2      # number of graphs in the batch

    x = jax.random.normal(key, (num_nodes, feat_dim), dtype=jnp.float32)
    # graph assignment: first 7 nodes -> graph 0, remaining 9 -> graph 1
    batch = jnp.concatenate([
        jnp.zeros((7,), jnp.int32),
        jnp.ones((9,), jnp.int32),
    ])

    ok = True
    for readout_type in ("add", "mean", "max"):
        out = graph_readout(x, batch, num_graphs=num_graphs,
                            readout_type=readout_type)
        out = jax.block_until_ready(out)
        ref = _reference_readout(x, batch, num_graphs, readout_type)
        if out.shape != (num_graphs, feat_dim):
            ok = False
        if not jnp.allclose(out, ref, atol=1e-5, rtol=1e-5):
            ok = False

    if ok:
        print("KERNEL_OK")
</pallas_src>

<mosaic_0001>
module attributes {stable_mosaic.version = 11 : i64} {
  func.func @kernel(%arg0: i32, %arg1: i32, %arg2: memref<1x128xi32, #tpu.memory_space<vmem>>, %arg3: memref<128x128xf32, #tpu.memory_space<vmem>>, %arg4: memref<8x128xf32, #tpu.memory_space<vmem>>, %arg5: memref<8x128xf32, #tpu.memory_space<vmem>>) attributes {dimension_semantics = [#tpu.dimension_semantics<parallel>, #tpu.dimension_semantics<arbitrary>], iteration_bounds = array<i64: 1, 1>, scalar_prefetch = 0 : i64, scratch_operands = 1 : i64, tpu.core_type = #tpu.core_type<tc>, window_params = [{transform_indices = @transform_0, window_bounds = array<i64: 1, 128>}, {transform_indices = @transform_1, window_bounds = array<i64: 128, 128>}, {transform_indices = @transform_2, window_bounds = array<i64: 8, 128>}]} {
    %c0_i32 = arith.constant 0 : i32
    %0 = arith.cmpi eq, %arg1, %c0_i32 : i32
    %1 = arith.extui %0 : i1 to i32
    %c0_i32_0 = arith.constant 0 : i32
    %2 = arith.cmpi ne, %1, %c0_i32_0 : i32
    scf.if %2 {
      %cst_11 = arith.constant 0.000000e+00 : f32
      %24 = vector.broadcast %cst_11 : f32 to vector<8x128xf32>
      %c0_12 = arith.constant 0 : index
      %c0_13 = arith.constant 0 : index
      %25 = vector.load %arg5[%c0_12, %c0_13] : memref<8x128xf32, #tpu.memory_space<vmem>>, vector<8x128xf32>
      tpu.vector_store %arg5[%c0_12, %c0_13], %24 {strides = array<i32>} : memref<8x128xf32, #tpu.memory_space<vmem>>, vector<8x128xf32>,
    } else {
    }
    %c0 = arith.constant 0 : index
    %c0_1 = arith.constant 0 : index
    %3 = vector.load %arg2[%c0, %c0_1] : memref<1x128xi32, #tpu.memory_space<vmem>>, vector<1x128xi32>
    %c0_2 = arith.constant 0 : index
    %c0_3 = arith.constant 0 : index
    %4 = vector.load %arg3[%c0_2, %c0_3] : memref<128x128xf32, #tpu.memory_space<vmem>>, vector<128x128xf32>
    %5 = tpu.iota {dimensions = array<i32: 0>} : vector<128x128xi32>
    %c128_i32 = arith.constant 128 : i32
    %6 = arith.muli %arg1, %c128_i32 : i32
    %c16_i32 = arith.constant 16 : i32
    %7 = arith.subi %c16_i32, %6 : i32
    %8 = vector.broadcast %7 : i32 to vector<128x128xi32>
    %9 = arith.cmpi slt, %5, %8 : vector<128x128xi32>
    %cst = arith.constant 0.000000e+00 : f32
    %10 = vector.broadcast %cst : f32 to vector<128x128xf32>
    %11 = arith.select %9, %4, %10 : vector<128x128xi1>, vector<128x128xf32>
    %12 = tpu.iota {dimensions = array<i32: 0>} : vector<8x128xi32>
    %13 = vector.broadcast %3 : vector<1x128xi32> to vector<8x128xi32>
    %14 = arith.cmpi eq, %12, %13 : vector<8x128xi32>
    %15 = arith.extui %14 : vector<8x128xi1> to vector<8x128xi32>
    %16 = arith.sitofp %15 : vector<8x128xi32> to vector<8x128xf32>
    %c0_4 = arith.constant 0 : index
    %c0_5 = arith.constant 0 : index
    %17 = vector.load %arg5[%c0_4, %c0_5] : memref<8x128xf32, #tpu.memory_space<vmem>>, vector<8x128xf32>
    %cst_6 = arith.constant dense<0.000000e+00> : vector<8x128xf32>
    %18 = tpu.matmul %16, %11, %cst_6 {dimension_numbers = #tpu.dot_dimension_numbers<[1], [0], [0], [1], [0, 0, 1, 1], [], []>} : vector<8x128xf32>, vector<128x128xf32>, vector<8x128xf32> -> vector<8x128xf32>
    %19 = arith.addf %17, %18 : vector<8x128xf32>
    %c0_7 = arith.constant 0 : index
    %c0_8 = arith.constant 0 : index
    %20 = vector.load %arg5[%c0_7, %c0_8] : memref<8x128xf32, #tpu.memory_space<vmem>>, vector<8x128xf32>
    tpu.vector_store %arg5[%c0_7, %c0_8], %19 {strides = array<i32>} : memref<8x128xf32, #tpu.memory_space<vmem>>, vector<8x128xf32>,
    %c0_i32_9 = arith.constant 0 : i32
    %21 = arith.cmpi eq, %arg1, %c0_i32_9 : i32
    %22 = arith.extui %21 : i1 to i32
    %c0_i32_10 = arith.constant 0 : i32
    %23 = arith.cmpi ne, %22, %c0_i32_10 : i32
    scf.if %23 {
      %c0_11 = arith.constant 0 : index
      %c0_12 = arith.constant 0 : index
      %24 = vector.load %arg5[%c0_11, %c0_12] : memref<8x128xf32, #tpu.memory_space<vmem>>, vector<8x128xf32>
      %c0_13 = arith.constant 0 : index
      %c0_14 = arith.constant 0 : index
      %25 = vector.load %arg4[%c0_13, %c0_14] : memref<8x128xf32, #tpu.memory_space<vmem>>, vector<8x128xf32>
      tpu.vector_store %arg4[%c0_13, %c0_14], %24 {strides = array<i32>} : memref<8x128xf32, #tpu.memory_space<vmem>>, vector<8x128xf32>,
    } else {
    }
    return
  }
  func.func @transform_0(%arg0: i32, %arg1: i32) -> (i32, i32) {
    %c0_i32 = arith.constant 0 : i32
    %c0_i32_0 = arith.constant 0 : i32
    return %c0_i32, %arg1 : i32, i32
  }
  func.func @transform_1(%arg0: i32, %arg1: i32) -> (i32, i32) {
    %c0_i32 = arith.constant 0 : i32
    return %arg1, %arg0 : i32, i32
  }
  func.func @transform_2(%arg0: i32, %arg1: i32) -> (i32, i32) {
    %c0_i32 = arith.constant 0 : i32
    %c0_i32_0 = arith.constant 0 : i32
    return %c0_i32, %arg0 : i32, i32
  }
}

</mosaic_0001>

<bundles_post_ra>
// kernel: graph_readout.1
= control target key start
LH: loop header
LB: loop body
LE: loop exit
PB: predicated region body
PF: predicated region fallthrough
CT: control target
= control target key end

     0   :  { %v33_v0 = vlaneseq  ;;  %v194_v1 = vmov 0.0|0.0   ;;  %vm195_vm0 = vmmov 0   ;;  %v196_v4 = vmov 0.0   ;;  %s225_s1 = inlined_call_operand.vmem [shape: f32[128,128], index: 1, kind: input, shape index: {}]   ;;  %s226_s0 = inlined_call_operand.vmem [shape: s32[1,128], index: 0, kind: input, shape index: {}]   ;;  %s227_s2 = inlined_call_operand.vmem [shape: f32[8,128], index: 2, kind: output, shape index: {}]  }
   0x1   :  { %187 = vmatprep.subr.bf16.mxu0 %v194_v1  ;;  %v17_v2 = vld [vmem:[%s225_s1] sm:$0xff]  ;;  %v18_v3 = vld [vmem:[%s225_s1 + $0x8] sm:$0xff]  ;;  %184 = vmatprep.mubr.msk.f32.mxu0 %vm195_vm0, %v196_v4  ;;  %v197_v8 = vmov 1.0  }
   0x2   :  { %v174_v5 = vld [vmem:[%s226_s0] ss:$0 sm:$0xff]  ;;  %v188_v6 = vpack.c.bf16 %v18_v3, %v17_v2  ;;  %v34_v7 = vshrl.u32 %v33_v0, 7 }
   0x4   :  { %189 = vmatpush3.bf16.msra.mxu0 %v188_v6  ;;  %vm89_vm1 = vcmp.eq.s32.totalorder %v34_v7, %v174_v5 }
   0x7   :  { %185 = vmatmul.mubr.msk.f32.vlgmr.msra.gmra.mrb[0].mxu0 %vm89_vm1, %v197_v8 }
  0xda   :  { %v159_v9 = vpop.f32.mrb[0].mxu0 }
  0xdb   :  { %169 = vst [vmem:[%s227_s2] sm:$0xff] %v159_v9  ;;  %v186_v10 = vpop.f32.mrb[1].mxu0 }

</bundles_post_ra>
